<compile_context>
chip_gen: v7x
topology: tpu7x:2x2x1
jax: 0.10.0
libtpu: 0.0.40
codegen_flags: <defaults>
</compile_context>

<pallas_src>
import functools
import math

import jax
import jax.numpy as jnp
from jax.experimental import pallas as pl
from jax.experimental.pallas import tpu as pltpu

_INV_SQRT2 = 1.0 / math.sqrt(2.0)


def _ffn_kernel(x_ref, w1_ref, b1_ref, w2_ref, b2_ref, o_ref, acc_ref, *, ck, n_chunks):
    # x_ref: (TM, dim) native dtype; w1_ref: (dim, dim_inner) bf16; b1_ref: (1, dim_inner) f32
    # w2_ref: (dim_inner, dim) bf16; b2_ref: (1, dim) f32; o_ref: (TM, dim); acc_ref: (TM, dim) f32
    # Cast the activation tile to bf16 in-kernel (no separate XLA cast pass).
    x = x_ref[...].astype(jnp.bfloat16)

    def chunk(off):
        # Linear 1 slice: bf16 operands, f32 MXU accumulation; bias add in f32.
        h = jnp.dot(x, w1_ref[:, pl.ds(off, ck)], preferred_element_type=jnp.float32)
        h = h + b1_ref[:, pl.ds(off, ck)]
        # Exact GELU (erf formulation, matches torch.nn.GELU default), in f32.
        h = 0.5 * h * (1.0 + jax.lax.erf(h * _INV_SQRT2))
        # Dropout(p=0.0) == identity at inference -> omitted.
        h = h.astype(jnp.bfloat16)
        # Linear 2 slice: f32 accumulation on the MXU.
        return jnp.dot(h, w2_ref[pl.ds(off, ck), :], preferred_element_type=jnp.float32)

    acc_ref[...] = chunk(0)
    if n_chunks > 1:
        if n_chunks <= 8:
            # Short fixed trip count: unroll at trace time.
            for k in range(1, n_chunks):
                acc_ref[...] += chunk(k * ck)
        else:
            def body(k, _):
                acc_ref[...] += chunk(pl.multiple_of(k * ck, ck))
                return 0
            jax.lax.fori_loop(1, n_chunks, body, 0)

    o_ref[...] = (acc_ref[...] + b2_ref[...]).astype(o_ref.dtype)


def _pick_chunk(dim_inner):
    """Largest dim_inner chunk <= 1024 that divides dim_inner (lane-aligned)."""
    if dim_inner <= 1024:
        return dim_inner
    for cand in (1024, 512, 384, 256, 128):
        if dim_inner % cand == 0:
            return cand
    return dim_inner  # fallback: single chunk


def _build_call(M, dim, dim_inner, TM, grid_m, out_dtype, ck, n_chunks,
                vmem_limit, cost, single_buffer_weights):
    resident_kwargs = {}
    if single_buffer_weights:
        # Constant index_map -> one buffer is enough; halves resident-weight VMEM.
        resident_kwargs = dict(pipeline_mode=pl.Buffered(1))

    def resident(shape):
        zeros = (0,) * len(shape)
        return pl.BlockSpec(shape, lambda i, z=zeros: z, **resident_kwargs)

    kernel = functools.partial(_ffn_kernel, ck=ck, n_chunks=n_chunks)

    return pl.pallas_call(
        kernel,
        out_shape=jax.ShapeDtypeStruct((M, dim), out_dtype),
        grid_spec=pltpu.PrefetchScalarGridSpec(
            num_scalar_prefetch=0,
            grid=(grid_m,),
            in_specs=[
                pl.BlockSpec((TM, dim), lambda i: (i, 0)),   # x tile (pipelined)
                resident((dim, dim_inner)),                  # w1 (resident)
                resident((1, dim_inner)),                    # b1 (resident)
                resident((dim_inner, dim)),                  # w2 (resident)
                resident((1, dim)),                          # b2 (resident)
            ],
            out_specs=pl.BlockSpec((TM, dim), lambda i: (i, 0)),
            scratch_shapes=[pltpu.VMEM((TM, dim), jnp.float32)],  # f32 accumulator
        ),
        compiler_params=pltpu.CompilerParams(
            dimension_semantics=("parallel",),   # shards M tiles across TCs on v7x
            vmem_limit_bytes=vmem_limit,
        ),
        cost_estimate=cost,
    )


def feed_forward(x, w1, b1, w2, b2, *, tm=512):
    """x: (B, S, dim); w1: (dim, dim_inner); b1: (dim_inner,);
    w2: (dim_inner, dim); b2: (dim,).  Returns (B, S, dim)."""
    B, S, dim = x.shape
    dim_inner = w1.shape[1]
    M = B * S
    out_dtype = x.dtype

    # Balanced token tile: multiple of 16 (bf16 packs 16 rows per sublane group),
    # capped at `tm`, chosen so the last tile isn't mostly padding.
    grid_m = max(1, pl.cdiv(M, tm))
    TM = min(((pl.cdiv(M, grid_m) + 15) // 16) * 16, ((M + 15) // 16) * 16)
    grid_m = pl.cdiv(M, TM)

    CK = _pick_chunk(dim_inner)
    n_chunks = dim_inner // CK

    # No pad, no activation cast in the wrapper (both would be separate,
    # un-hidden XLA passes over the full activation tensor).
    x2d = x.reshape(M, dim)

    # bf16 MXU operands for the weights (no-op if stored bf16 upstream);
    # biases stay f32 and are added post-accumulation.
    w1_bf = w1 if w1.dtype == jnp.bfloat16 else w1.astype(jnp.bfloat16)
    w2_bf = w2 if w2.dtype == jnp.bfloat16 else w2.astype(jnp.bfloat16)
    b1_2d = b1.reshape(1, dim_inner).astype(jnp.float32)
    b2_2d = b2.reshape(1, dim).astype(jnp.float32)

    # --- VMEM accounting (per TensorCore) ---
    x_item = jnp.dtype(x.dtype).itemsize
    o_item = jnp.dtype(out_dtype).itemsize
    w_bytes = (dim * dim_inner + dim_inner * dim) * 2          # bf16 weights
    b_bytes = (dim_inner + dim) * 4                            # f32 biases
    tile_bytes = 2 * TM * dim * (x_item + o_item)              # double-buffered x / out tiles
    acc_bytes = TM * dim * 4                                   # f32 accumulator scratch
    h_bytes = TM * CK * (4 + 2)                                # f32 h + its bf16 cast, live together

    def vmem_limit_for(weight_buffers):
        need = weight_buffers * (w_bytes + b_bytes) + tile_bytes + acc_bytes + h_bytes
        need = int(need * 1.25) + (4 << 20)                    # headroom for compiler scratch
        try:
            cap = pltpu.get_tpu_info().vmem_capacity_bytes     # per-TC on v7x (64 MiB)
        except Exception:
            cap = 64 << 20
        ceiling = min(100 << 20, int(cap * 0.85))              # ~100 MiB v5e/v6e, ~54 MiB v7x
        return max(16 << 20, min(need, ceiling))

    cost = pl.CostEstimate(
        flops=2 * M * dim * dim_inner * 2,                     # two matmuls
        transcendentals=M * dim_inner,                         # erf in the GELU
        bytes_accessed=(M * dim * x_item + w_bytes + b_bytes + M * dim * o_item),
    )

    try:
        call = _build_call(M, dim, dim_inner, TM, grid_m, out_dtype, CK, n_chunks,
                           vmem_limit_for(1), cost, single_buffer_weights=True)
        out2d = jax.block_until_ready(call(x2d, w1_bf, b1_2d, w2_bf, b2_2d))
    except Exception:
        # Fallback: JAX version without Buffered(1) single-buffering support.
        call = _build_call(M, dim, dim_inner, TM, grid_m, out_dtype, CK, n_chunks,
                           vmem_limit_for(2), cost, single_buffer_weights=False)
        out2d = call(x2d, w1_bf, b1_2d, w2_bf, b2_2d)

    return out2d.reshape(B, S, dim)


def _reference_f32(x, w1, b1, w2, b2):
    h = jnp.einsum("bsd,dh->bsh", x, w1) + b1
    h = 0.5 * h * (1.0 + jax.lax.erf(h / jnp.sqrt(2.0)))
    return jnp.einsum("bsh,hd->bsd", h, w2) + b2


def _reference_bf16(x, w1, b1, w2, b2):
    # Mirrors the kernel's mixed-precision recipe (bf16 matmuls, f32 accum/GELU).
    xb, w1b, w2b = (a.astype(jnp.bfloat16) for a in (x, w1, w2))
    h = jnp.einsum("bsd,dh->bsh", xb, w1b, preferred_element_type=jnp.float32) + b1
    h = 0.5 * h * (1.0 + jax.lax.erf(h / jnp.sqrt(2.0)))
    h = h.astype(jnp.bfloat16)
    return jnp.einsum("bsh,hd->bsd", h, w2b, preferred_element_type=jnp.float32) + b2


if __name__ == "__main__":
    # Small shapes consistent with a ViT FeedForward block.
    B, S, dim, dim_inner = 2, 8, 32, 64

    key = jax.random.PRNGKey(0)
    kx, kw1, kb1, kw2, kb2 = jax.random.split(key, 5)

    x = jax.random.normal(kx, (B, S, dim), dtype=jnp.float32)

    # Deterministic parameter init (PyTorch-style uniform bounds, transposed to (in, out)).
    bound1 = 1.0 / math.sqrt(dim)
    w1 = jax.random.uniform(kw1, (dim, dim_inner), jnp.float32, -bound1, bound1)
    b1 = jax.random.uniform(kb1, (dim_inner,), jnp.float32, -bound1, bound1)
    bound2 = 1.0 / math.sqrt(dim_inner)
    w2 = jax.random.uniform(kw2, (dim_inner, dim), jnp.float32, -bound2, bound2)
    b2 = jax.random.uniform(kb2, (dim,), jnp.float32, -bound2, bound2)

    out = feed_forward(x, w1, b1, w2, b2)
    out = jax.block_until_ready(out)
    assert out.shape == (B, S, dim)

    # Tight check against a reference using the same mixed-precision recipe.
    ref_mixed = _reference_bf16(x, w1, b1, w2, b2)
    assert jnp.allclose(out, ref_mixed, atol=5e-4, rtol=5e-4), \
        float(jnp.max(jnp.abs(out - ref_mixed)))

    # Loose check against the pure-f32 PyTorch-equivalent math (bf16 rounding budget).
    ref_f32 = _reference_f32(x, w1, b1, w2, b2)
    assert jnp.allclose(out, ref_f32, atol=3e-2, rtol=3e-2)

    print("KERNEL_OK")
</pallas_src>

<mosaic_0001>
module attributes {stable_mosaic.version = 11 : i64} {
  func.func @_ffn_kernel(%arg0: i32, %arg1: memref<16x32xf32, #tpu.memory_space<vmem>>, %arg2: memref<32x64xbf16, #tpu.memory_space<vmem>>, %arg3: memref<1x64xf32, #tpu.memory_space<vmem>>, %arg4: memref<64x32xbf16, #tpu.memory_space<vmem>>, %arg5: memref<1x32xf32, #tpu.memory_space<vmem>>, %arg6: memref<16x32xf32, #tpu.memory_space<vmem>>, %arg7: memref<16x32xf32, #tpu.memory_space<vmem>>) attributes {dimension_semantics = [#tpu.dimension_semantics<parallel>], iteration_bounds = array<i64: 1>, scalar_prefetch = 0 : i64, scratch_operands = 1 : i64, tpu.core_type = #tpu.core_type<tc>, window_params = [{transform_indices = @transform_0, window_bounds = array<i64: 16, 32>}, {pipeline_mode = #tpu.pipeline_mode<synchronous>, transform_indices = @transform_1, window_bounds = array<i64: 32, 64>}, {pipeline_mode = #tpu.pipeline_mode<synchronous>, transform_indices = @transform_2, window_bounds = array<i64: 1, 64>}, {pipeline_mode = #tpu.pipeline_mode<synchronous>, transform_indices = @transform_3, window_bounds = array<i64: 64, 32>}, {pipeline_mode = #tpu.pipeline_mode<synchronous>, transform_indices = @transform_4, window_bounds = array<i64: 1, 32>}, {transform_indices = @transform_5, window_bounds = array<i64: 16, 32>}]} {
    %c0 = arith.constant 0 : index
    %c0_0 = arith.constant 0 : index
    %0 = vector.load %arg1[%c0, %c0_0] : memref<16x32xf32, #tpu.memory_space<vmem>>, vector<16x32xf32>
    %1 = arith.truncf %0 : vector<16x32xf32> to vector<16x32xbf16>
    %c0_1 = arith.constant 0 : index
    %c0_2 = arith.constant 0 : index
    %2 = vector.load %arg2[%c0_1, %c0_2] : memref<32x64xbf16, #tpu.memory_space<vmem>>, vector<32x64xbf16>
    %cst = arith.constant dense<0.000000e+00> : vector<16x64xf32>
    %3 = tpu.matmul %1, %2, %cst {dimension_numbers = #tpu.dot_dimension_numbers<[1], [0], [0], [1], [0, 0, 1, 1], [], []>} : vector<16x32xbf16>, vector<32x64xbf16>, vector<16x64xf32> -> vector<16x64xf32>
    %c0_3 = arith.constant 0 : index
    %c0_4 = arith.constant 0 : index
    %4 = vector.load %arg3[%c0_3, %c0_4] : memref<1x64xf32, #tpu.memory_space<vmem>>, vector<1x64xf32>
    %5 = vector.broadcast %4 : vector<1x64xf32> to vector<16x64xf32>
    %6 = arith.addf %3, %5 : vector<16x64xf32>
    %cst_5 = arith.constant 5.000000e-01 : f32
    %7 = vector.broadcast %cst_5 : f32 to vector<16x64xf32>
    %8 = arith.mulf %7, %6 : vector<16x64xf32>
    %cst_6 = arith.constant 0.707106769 : f32
    %9 = vector.broadcast %cst_6 : f32 to vector<16x64xf32>
    %10 = arith.mulf %6, %9 : vector<16x64xf32>
    %11 = math.erf %10 : vector<16x64xf32>
    %cst_7 = arith.constant 1.000000e+00 : f32
    %12 = vector.broadcast %cst_7 : f32 to vector<16x64xf32>
    %13 = arith.addf %12, %11 : vector<16x64xf32>
    %14 = arith.mulf %8, %13 : vector<16x64xf32>
    %15 = arith.truncf %14 : vector<16x64xf32> to vector<16x64xbf16>
    %c0_8 = arith.constant 0 : index
    %c0_9 = arith.constant 0 : index
    %16 = vector.load %arg4[%c0_8, %c0_9] : memref<64x32xbf16, #tpu.memory_space<vmem>>, vector<64x32xbf16>
    %cst_10 = arith.constant dense<0.000000e+00> : vector<16x32xf32>
    %17 = tpu.matmul %15, %16, %cst_10 {dimension_numbers = #tpu.dot_dimension_numbers<[1], [0], [0], [1], [0, 0, 1, 1], [], []>} : vector<16x64xbf16>, vector<64x32xbf16>, vector<16x32xf32> -> vector<16x32xf32>
    %c0_11 = arith.constant 0 : index
    %c0_12 = arith.constant 0 : index
    %18 = vector.load %arg7[%c0_11, %c0_12] : memref<16x32xf32, #tpu.memory_space<vmem>>, vector<16x32xf32>
    tpu.vector_store %arg7[%c0_11, %c0_12], %17 {strides = array<i32>} : memref<16x32xf32, #tpu.memory_space<vmem>>, vector<16x32xf32>,
    %c0_13 = arith.constant 0 : index
    %c0_14 = arith.constant 0 : index
    %19 = vector.load %arg7[%c0_13, %c0_14] : memref<16x32xf32, #tpu.memory_space<vmem>>, vector<16x32xf32>
    %c0_15 = arith.constant 0 : index
    %c0_16 = arith.constant 0 : index
    %20 = vector.load %arg5[%c0_15, %c0_16] : memref<1x32xf32, #tpu.memory_space<vmem>>, vector<1x32xf32>
    %21 = vector.broadcast %20 : vector<1x32xf32> to vector<16x32xf32>
    %22 = arith.addf %19, %21 : vector<16x32xf32>
    %c0_17 = arith.constant 0 : index
    %c0_18 = arith.constant 0 : index
    %23 = vector.load %arg6[%c0_17, %c0_18] : memref<16x32xf32, #tpu.memory_space<vmem>>, vector<16x32xf32>
    tpu.vector_store %arg6[%c0_17, %c0_18], %22 {strides = array<i32>} : memref<16x32xf32, #tpu.memory_space<vmem>>, vector<16x32xf32>,
    return
  }
  func.func @transform_0(%arg0: i32) -> (i32, i32) {
    %c0_i32 = arith.constant 0 : i32
    %c0_i32_0 = arith.constant 0 : i32
    return %arg0, %c0_i32 : i32, i32
  }
  func.func @transform_1(%arg0: i32) -> (i32, i32) {
    %c0_i32 = arith.constant 0 : i32
    %c0_i32_0 = arith.constant 0 : i32
    %c0_i32_1 = arith.constant 0 : i32
    return %c0_i32, %c0_i32_0 : i32, i32
  }
  func.func @transform_2(%arg0: i32) -> (i32, i32) {
    %c0_i32 = arith.constant 0 : i32
    %c0_i32_0 = arith.constant 0 : i32
    %c0_i32_1 = arith.constant 0 : i32
    return %c0_i32, %c0_i32_0 : i32, i32
  }
  func.func @transform_3(%arg0: i32) -> (i32, i32) {
    %c0_i32 = arith.constant 0 : i32
    %c0_i32_0 = arith.constant 0 : i32
    %c0_i32_1 = arith.constant 0 : i32
    return %c0_i32, %c0_i32_0 : i32, i32
  }
  func.func @transform_4(%arg0: i32) -> (i32, i32) {
    %c0_i32 = arith.constant 0 : i32
    %c0_i32_0 = arith.constant 0 : i32
    %c0_i32_1 = arith.constant 0 : i32
    return %c0_i32, %c0_i32_0 : i32, i32
  }
  func.func @transform_5(%arg0: i32) -> (i32, i32) {
    %c0_i32 = arith.constant 0 : i32
    %c0_i32_0 = arith.constant 0 : i32
    return %arg0, %c0_i32 : i32, i32
  }
}

module attributes {stable_mosaic.version = 11 : i64} {
  func.func @_ffn_kernel(%arg0: i32, %arg1: memref<16x32xf32, #tpu.memory_space<vmem>>, %arg2: memref<32x64xbf16, #tpu.memory_space<vmem>>, %arg3: memref<1x64xf32, #tpu.memory_space<vmem>>, %arg4: memref<64x32xbf16, #tpu.memory_space<vmem>>, %arg5: memref<1x32xf32, #tpu.memory_space<vmem>>, %arg6: memref<16x32xf32, #tpu.memory_space<vmem>>, %arg7: memref<16x32xf32, #tpu.memory_space<vmem>>) attributes {dimension_semantics = [#tpu.dimension_semantics<parallel>], iteration_bounds = array<i64: 1>, scalar_prefetch = 0 : i64, scratch_operands = 1 : i64, tpu.core_type = #tpu.core_type<tc>, window_params = [{transform_indices = @transform_0, window_bounds = array<i64: 16, 32>}, {pipeline_mode = #tpu.pipeline_mode<synchronous>, transform_indices = @transform_1, window_bounds = array<i64: 32, 64>}, {pipeline_mode = #tpu.pipeline_mode<synchronous>, transform_indices = @transform_2, window_bounds = array<i64: 1, 64>}, {pipeline_mode = #tpu.pipeline_mode<synchronous>, transform_indices = @transform_3, window_bounds = array<i64: 64, 32>}, {pipeline_mode = #tpu.pipeline_mode<synchronous>, transform_indices = @transform_4, window_bounds = array<i64: 1, 32>}, {transform_indices = @transform_5, window_bounds = array<i64: 16, 32>}]} {
    %c0 = arith.constant 0 : index
    %c0_0 = arith.constant 0 : index
    %0 = vector.load %arg1[%c0, %c0_0] : memref<16x32xf32, #tpu.memory_space<vmem>>, vector<16x32xf32>
    %1 = arith.truncf %0 : vector<16x32xf32> to vector<16x32xbf16>
    %c0_1 = arith.constant 0 : index
    %c0_2 = arith.constant 0 : index
    %2 = vector.load %arg2[%c0_1, %c0_2] : memref<32x64xbf16, #tpu.memory_space<vmem>>, vector<32x64xbf16>
    %cst = arith.constant dense<0.000000e+00> : vector<16x64xf32>
    %3 = tpu.matmul %1, %2, %cst {dimension_numbers = #tpu.dot_dimension_numbers<[1], [0], [0], [1], [0, 0, 1, 1], [], []>} : vector<16x32xbf16>, vector<32x64xbf16>, vector<16x64xf32> -> vector<16x64xf32>
    %c0_3 = arith.constant 0 : index
    %c0_4 = arith.constant 0 : index
    %4 = vector.load %arg3[%c0_3, %c0_4] : memref<1x64xf32, #tpu.memory_space<vmem>>, vector<1x64xf32>
    %5 = vector.broadcast %4 : vector<1x64xf32> to vector<16x64xf32>
    %6 = arith.addf %3, %5 : vector<16x64xf32>
    %cst_5 = arith.constant 5.000000e-01 : f32
    %7 = vector.broadcast %cst_5 : f32 to vector<16x64xf32>
    %8 = arith.mulf %7, %6 : vector<16x64xf32>
    %cst_6 = arith.constant 0.707106769 : f32
    %9 = vector.broadcast %cst_6 : f32 to vector<16x64xf32>
    %10 = arith.mulf %6, %9 : vector<16x64xf32>
    %11 = math.erf %10 : vector<16x64xf32>
    %cst_7 = arith.constant 1.000000e+00 : f32
    %12 = vector.broadcast %cst_7 : f32 to vector<16x64xf32>
    %13 = arith.addf %12, %11 : vector<16x64xf32>
    %14 = arith.mulf %8, %13 : vector<16x64xf32>
    %15 = arith.truncf %14 : vector<16x64xf32> to vector<16x64xbf16>
    %c0_8 = arith.constant 0 : index
    %c0_9 = arith.constant 0 : index
    %16 = vector.load %arg4[%c0_8, %c0_9] : memref<64x32xbf16, #tpu.memory_space<vmem>>, vector<64x32xbf16>
    %cst_10 = arith.constant dense<0.000000e+00> : vector<16x32xf32>
    %17 = tpu.matmul %15, %16, %cst_10 {dimension_numbers = #tpu.dot_dimension_numbers<[1], [0], [0], [1], [0, 0, 1, 1], [], []>} : vector<16x64xbf16>, vector<64x32xbf16>, vector<16x32xf32> -> vector<16x32xf32>
    %c0_11 = arith.constant 0 : index
    %c0_12 = arith.constant 0 : index
    %18 = vector.load %arg7[%c0_11, %c0_12] : memref<16x32xf32, #tpu.memory_space<vmem>>, vector<16x32xf32>
    tpu.vector_store %arg7[%c0_11, %c0_12], %17 {strides = array<i32>} : memref<16x32xf32, #tpu.memory_space<vmem>>, vector<16x32xf32>,
    %c0_13 = arith.constant 0 : index
    %c0_14 = arith.constant 0 : index
    %19 = vector.load %arg7[%c0_13, %c0_14] : memref<16x32xf32, #tpu.memory_space<vmem>>, vector<16x32xf32>
    %c0_15 = arith.constant 0 : index
    %c0_16 = arith.constant 0 : index
    %20 = vector.load %arg5[%c0_15, %c0_16] : memref<1x32xf32, #tpu.memory_space<vmem>>, vector<1x32xf32>
    %21 = vector.broadcast %20 : vector<1x32xf32> to vector<16x32xf32>
    %22 = arith.addf %19, %21 : vector<16x32xf32>
    %c0_17 = arith.constant 0 : index
    %c0_18 = arith.constant 0 : index
    %23 = vector.load %arg6[%c0_17, %c0_18] : memref<16x32xf32, #tpu.memory_space<vmem>>, vector<16x32xf32>
    tpu.vector_store %arg6[%c0_17, %c0_18], %22 {strides = array<i32>} : memref<16x32xf32, #tpu.memory_space<vmem>>, vector<16x32xf32>,
    return
  }
  func.func @transform_0(%arg0: i32) -> (i32, i32) {
    %c0_i32 = arith.constant 0 : i32
    %c0_i32_0 = arith.constant 0 : i32
    return %arg0, %c0_i32 : i32, i32
  }
  func.func @transform_1(%arg0: i32) -> (i32, i32) {
    %c0_i32 = arith.constant 0 : i32
    %c0_i32_0 = arith.constant 0 : i32
    %c0_i32_1 = arith.constant 0 : i32
    return %c0_i32, %c0_i32_0 : i32, i32
  }
  func.func @transform_2(%arg0: i32) -> (i32, i32) {
    %c0_i32 = arith.constant 0 : i32
    %c0_i32_0 = arith.constant 0 : i32
    %c0_i32_1 = arith.constant 0 : i32
    return %c0_i32, %c0_i32_0 : i32, i32
  }
  func.func @transform_3(%arg0: i32) -> (i32, i32) {
    %c0_i32 = arith.constant 0 : i32
    %c0_i32_0 = arith.constant 0 : i32
    %c0_i32_1 = arith.constant 0 : i32
    return %c0_i32, %c0_i32_0 : i32, i32
  }
  func.func @transform_4(%arg0: i32) -> (i32, i32) {
    %c0_i32 = arith.constant 0 : i32
    %c0_i32_0 = arith.constant 0 : i32
    %c0_i32_1 = arith.constant 0 : i32
    return %c0_i32, %c0_i32_0 : i32, i32
  }
  func.func @transform_5(%arg0: i32) -> (i32, i32) {
    %c0_i32 = arith.constant 0 : i32
    %c0_i32_0 = arith.constant 0 : i32
    return %arg0, %c0_i32 : i32, i32
  }
}

</mosaic_0001>

<bundles_post_ra>
// kernel: tpu_custom_call.1
= control target key start
LH: loop header
LB: loop body
LE: loop exit
PB: predicated region body
PF: predicated region fallthrough
CT: control target
= control target key end

     0   :  { %v289_v1 = vmov 0.0   ;;  %vm290_vm0 = vmmov 0   ;;  %s371_s0 = inlined_call_operand.vmem [shape: f32[16,32], index: 0, kind: input, shape index: {}]   ;;  %s372_s1 = inlined_call_operand.vmem [shape: bf16[32,64], index: 1, kind: input, shape index: {}]   ;;  %s373_s2 = inlined_call_operand.vmem [shape: f32[1,64], index: 2, kind: input, shape index: {}]   ;;  %s374_s3 = inlined_call_operand.vmem [shape: bf16[64,32], index: 3, kind: input, shape index: {}]   ;;  %s375_s4 = inlined_call_operand.vmem [shape: f32[1,32], index: 4, kind: input, shape index: {}]   ;;  %s376_s5 = inlined_call_operand.hbm [shape: f32[16,32], index: 5, kind: output, shape index: {}]  }
   0x1   :  { %v255_v0 = vld [vmem:[%s372_s1] sm:$0xff]   ;;  %230 = vmatprep.subr.bf16.mxu0 %v289_v1  ;;  %238 = vmatprep.subr.bf16.mxu1 %v289_v1  ;;  %v256_v2 = vld [vmem:[%s372_s1 + $0x8] sm:$0xff]  }
   0x2   :  { %231 = vmatpush3.bf16.msra.mxu0 %v255_v0  ;;  %234 = vmatprep.mubr.msk.bf16.mxu0 %vm290_vm0, %v289_v1  ;;  %v22_v3 = vld [vmem:[%s371_s0] sm:$0xff]  ;;  %v23_v4 = vld [vmem:[%s371_s0 + $0x8] sm:$0xff] }
   0x3   :  { %232 = vmatprep.subr.bf16.mxu0 %v289_v1  ;;  %246 = vmatprep.mubr.msk.bf16.mxu1 %vm290_vm0, %v289_v1  ;;  %v24_v5 = vpack.c.bf16 %v23_v4, %v22_v3 }
   0x4   :  { %10 = vsyncpa [#allocation4], 0  ;;  %vm48_vm1 = vcmask 261120   ;;  %v257_v6 = vld [vmem:[%s374_s3] sm:$0xff]   ;;  %v258_v7 = vld [vmem:[%s374_s3 + $0x8] sm:$0xff]   ;;  %vm136_vm2 = vcmask 523264  }
   0x5   :  { %239 = vmatpush3.bf16.msra.mxu1 %v257_v6  ;;  %v259_v8 = vld [vmem:[%s374_s3 + $0x10] sm:$0xff]   ;;  %v260_v9 = vld [vmem:[%s374_s3 + $0x18] sm:$0xff]   ;;  %v212_v10 = vld [vmem:[%s373_s2] ss:$0 sm:$0xff]  ;;  %s291_s9 = smov [#allocation3]  }
   0x6   :  { %233 = vmatpush3.bf16.msra.mxu0 %v256_v2  ;;  %240 = vmatprep.subr.bf16.mxu1 %v289_v1  ;;  %v221_v32 = vld [vmem:[%s375_s4] ss:$0 sm:$0xff]  ;;  %s201_s10 = sshll.u32 %s291_s9, 4  ;;  %s202_s10 = int_to_ptr.vmem [resolvable:$true] %s201_s10 }
   0x7   :  { %s265_s11 = scalar_lea.vmem %s202_s10, 256  ;;  %p270_p1 = scmp.lt.s32.totalorder %s202_s10, %s202_s10 }
   0x8   :  { %p266_p0 = scmp.ne.s32.totalorder %s202_s10, %s265_s11  ;;  %p271_p2 = scmp.lt.s32.totalorder %s265_s11, %s265_s11 }
   0x9   :  { %235 = vmatmul.mubr.msk.bf16.vlgmr.msra.gmra.mrb[0].mxu0 %vm48_vm1, %v24_v5  ;;  %241 = vmatpush3.bf16.msra.mxu1 %v258_v7 }
   0xa   :  { %242 = vmatprep.subr.bf16.mxu1 %v289_v1  ;;  %p272_p3 = por %p271_p2, %p270_p1 }
   0xc   :  { %p273_p4 = pnand %p272_p3, %p266_p0 }
   0xd   :  { %243 = vmatpush3.bf16.msra.mxu1 %v259_v8 }
   0xe   :  { %244 = vmatprep.subr.bf16.mxu1 %v289_v1 }
  0x11   :  { %245 = vmatpush3.bf16.msra.mxu1 %v260_v9 }
  0xdc   :  { %v86_v11 = vpop.f32.mrb[0].mxu0 }
  0xdd   :  { %v87_v12 = vadd.f32 %v212_v10, %v86_v11  ;;  %v236_v13 = vpop.f32.mrb[1].mxu0 }
  0xde   :  { %v89_v14 = vpop.f32.mrb[2].mxu0 }
  0xdf   :  { %v95_v15 = vmul.f32 0.70710677, %v87_v12  ;;  %v90_v16 = vadd.f32 %v212_v10, %v89_v14  ;;  %v237_v17 = vpop.f32.mrb[3].mxu0  ;;  %v93_v22 = vmul.f32 0.5, %v87_v12 }
  0xe1   :  { %261 = verf.f32 %v95_v15  ;;  %v96_v18 = vmul.f32 0.70710677, %v90_v16  ;;  %v94_v23 = vmul.f32 0.5, %v90_v16 }
  0xe3   :  { %263 = verf.f32 %v96_v18 }
  0xeb   :  { %v262_v19 = vpop.eup %261 }
  0xec   :  { %v99_v20 = vadd.f32 1.0, %v262_v19 }
  0xed   :  { %v264_v21 = vpop.eup %263 }
  0xee   :  { %v100_v24 = vadd.f32 1.0, %v264_v21  ;;  %v101_v25 = vmul.f32 %v99_v20, %v93_v22 }
  0xf0   :  { %v102_v26 = vmul.f32 %v100_v24, %v94_v23 }
  0xf2   :  { %v103_v27 = vpack.c.bf16 %v102_v26, %v101_v25 }
  0xf4   :  { %247 = vmatmul.mubr.msk.bf16.vlgmr.msra.gmra.mrb[0].mxu1 %vm136_vm2, %v103_v27 }
 0x1c7   :  { %v174_v28 = vpop.f32.mrb[0].mxu1 }
 0x1c8   :  { %181 = vst.msk [vmem:[#allocation2] sm:$0xff] %vm48_vm1, %v174_v28  ;;  %v248_v29 = vpop.f32.mrb[1].mxu1 }
 0x1c9   :  { %v177_v30 = vpop.f32.mrb[2].mxu1 }
 0x1ca   :  { %182 = vst.msk [vmem:[#allocation2 + $0x8] sm:$0xff] %vm48_vm1, %v177_v30  ;;  %v249_v31 = vpop.f32.mrb[3].mxu1 }
 0x1cf   :  { %v183_v33 = vld [vmem:[#allocation2] sm:$0xff] }
 0x1d0   :  { %v192_v34 = vadd.f32 %v221_v32, %v183_v33 }
 0x1d1   :  { %v184_v35 = vld [vmem:[#allocation2 + $0x8] sm:$0xff] }
 0x1d2   :  { %v193_v36 = vadd.f32 %v221_v32, %v184_v35  ;;  %194 = vst.msk [vmem:[#allocation3] sm:$0xff] %vm48_vm1, %v192_v34 }
 0x1d4   :  { %195 = vst.msk [vmem:[#allocation3 + $0x8] sm:$0xff] %vm48_vm1, %v193_v36 }
 0x1d5   :  { %276 = shalt.err (!%p273_p4)
}
 0x1d6   :  { %s277_s13 = scalar_lea.hbm %s376_s5, 256 }
 0x1d7   :  { %p278_p5 = scmp.ne.s32.totalorder %s376_s5, %s277_s13  ;;  %p281_p6 = scmp.lt.u32.totalorder %s277_s13, %s376_s5 }
 0x1d9   :  { %p283_p7 = pnand %p281_p6, %p278_p5 }
 0x1db   :  { %286 = shalt.err (!%p283_p7)
}
 0x1dc   :  { %s292_s18 = smov 128   ;;  %s293_s19 = smov 8  }
 0x1dd   :  { %207 = dma.vmem_to_hbm [thread:$0]  %s202_s10, 256, %s376_s5, [#allocation4], %s292_s18, %s292_s18, %s293_s19  }
 0x1de   :  { %287 = dma.done.wait [#allocation4], 256  }
 0x1df   :  { %288 = vsyncadd [#allocation4], 4294967040 }
 0x1e0   :  { %211 = vsyncpa [#allocation4], 1 }

// kernel: tpu_custom_call.1
= control target key start
LH: loop header
LB: loop body
LE: loop exit
PB: predicated region body
PF: predicated region fallthrough
CT: control target
= control target key end

     0   :  { %v289_v1 = vmov 0.0   ;;  %vm290_vm0 = vmmov 0   ;;  %s371_s0 = inlined_call_operand.vmem [shape: f32[16,32], index: 0, kind: input, shape index: {}]   ;;  %s372_s1 = inlined_call_operand.vmem [shape: bf16[32,64], index: 1, kind: input, shape index: {}]   ;;  %s373_s2 = inlined_call_operand.vmem [shape: f32[1,64], index: 2, kind: input, shape index: {}]   ;;  %s374_s3 = inlined_call_operand.vmem [shape: bf16[64,32], index: 3, kind: input, shape index: {}]   ;;  %s375_s4 = inlined_call_operand.vmem [shape: f32[1,32], index: 4, kind: input, shape index: {}]   ;;  %s376_s5 = inlined_call_operand.hbm [shape: f32[16,32], index: 5, kind: output, shape index: {}]  }
   0x1   :  { %v255_v0 = vld [vmem:[%s372_s1] sm:$0xff]   ;;  %230 = vmatprep.subr.bf16.mxu0 %v289_v1  ;;  %238 = vmatprep.subr.bf16.mxu1 %v289_v1  ;;  %v256_v2 = vld [vmem:[%s372_s1 + $0x8] sm:$0xff]  }
   0x2   :  { %231 = vmatpush3.bf16.msra.mxu0 %v255_v0  ;;  %234 = vmatprep.mubr.msk.bf16.mxu0 %vm290_vm0, %v289_v1  ;;  %v22_v3 = vld [vmem:[%s371_s0] sm:$0xff]  ;;  %v23_v4 = vld [vmem:[%s371_s0 + $0x8] sm:$0xff] }
   0x3   :  { %232 = vmatprep.subr.bf16.mxu0 %v289_v1  ;;  %246 = vmatprep.mubr.msk.bf16.mxu1 %vm290_vm0, %v289_v1  ;;  %v24_v5 = vpack.c.bf16 %v23_v4, %v22_v3 }
   0x4   :  { %10 = vsyncpa [#allocation4], 0  ;;  %vm48_vm1 = vcmask 261120   ;;  %v257_v6 = vld [vmem:[%s374_s3] sm:$0xff]   ;;  %v258_v7 = vld [vmem:[%s374_s3 + $0x8] sm:$0xff]   ;;  %vm136_vm2 = vcmask 523264  }
   0x5   :  { %239 = vmatpush3.bf16.msra.mxu1 %v257_v6  ;;  %v259_v8 = vld [vmem:[%s374_s3 + $0x10] sm:$0xff]   ;;  %v260_v9 = vld [vmem:[%s374_s3 + $0x18] sm:$0xff]   ;;  %v212_v10 = vld [vmem:[%s373_s2] ss:$0 sm:$0xff]  ;;  %s291_s9 = smov [#allocation3]  }
   0x6   :  { %233 = vmatpush3.bf16.msra.mxu0 %v256_v2  ;;  %240 = vmatprep.subr.bf16.mxu1 %v289_v1  ;;  %v221_v32 = vld [vmem:[%s375_s4] ss:$0 sm:$0xff]  ;;  %s201_s10 = sshll.u32 %s291_s9, 4  ;;  %s202_s10 = int_to_ptr.vmem [resolvable:$true] %s201_s10 }
   0x7   :  { %s265_s11 = scalar_lea.vmem %s202_s10, 256  ;;  %p270_p1 = scmp.lt.s32.totalorder %s202_s10, %s202_s10 }
   0x8   :  { %p266_p0 = scmp.ne.s32.totalorder %s202_s10, %s265_s11  ;;  %p271_p2 = scmp.lt.s32.totalorder %s265_s11, %s265_s11 }
   0x9   :  { %235 = vmatmul.mubr.msk.bf16.vlgmr.msra.gmra.mrb[0].mxu0 %vm48_vm1, %v24_v5  ;;  %241 = vmatpush3.bf16.msra.mxu1 %v258_v7 }
   0xa   :  { %242 = vmatprep.subr.bf16.mxu1 %v289_v1  ;;  %p272_p3 = por %p271_p2, %p270_p1 }
   0xc   :  { %p273_p4 = pnand %p272_p3, %p266_p0 }
   0xd   :  { %243 = vmatpush3.bf16.msra.mxu1 %v259_v8 }
   0xe   :  { %244 = vmatprep.subr.bf16.mxu1 %v289_v1 }
  0x11   :  { %245 = vmatpush3.bf16.msra.mxu1 %v260_v9 }
  0xdc   :  { %v86_v11 = vpop.f32.mrb[0].mxu0 }
  0xdd   :  { %v87_v12 = vadd.f32 %v212_v10, %v86_v11  ;;  %v236_v13 = vpop.f32.mrb[1].mxu0 }
  0xde   :  { %v89_v14 = vpop.f32.mrb[2].mxu0 }
  0xdf   :  { %v95_v15 = vmul.f32 0.70710677, %v87_v12  ;;  %v90_v16 = vadd.f32 %v212_v10, %v89_v14  ;;  %v237_v17 = vpop.f32.mrb[3].mxu0  ;;  %v93_v22 = vmul.f32 0.5, %v87_v12 }
  0xe1   :  { %261 = verf.f32 %v95_v15  ;;  %v96_v18 = vmul.f32 0.70710677, %v90_v16  ;;  %v94_v23 = vmul.f32 0.5, %v90_v16 }
  0xe3   :  { %263 = verf.f32 %v96_v18 }
  0xeb   :  { %v262_v19 = vpop.eup %261 }
  0xec   :  { %v99_v20 = vadd.f32 1.0, %v262_v19 }
  0xed   :  { %v264_v21 = vpop.eup %263 }
  0xee   :  { %v100_v24 = vadd.f32 1.0, %v264_v21  ;;  %v101_v25 = vmul.f32 %v99_v20, %v93_v22 }
  0xf0   :  { %v102_v26 = vmul.f32 %v100_v24, %v94_v23 }
  0xf2   :  { %v103_v27 = vpack.c.bf16 %v102_v26, %v101_v25 }
  0xf4   :  { %247 = vmatmul.mubr.msk.bf16.vlgmr.msra.gmra.mrb[0].mxu1 %vm136_vm2, %v103_v27 }
 0x1c7   :  { %v174_v28 = vpop.f32.mrb[0].mxu1 }
 0x1c8   :  { %181 = vst.msk [vmem:[#allocation2] sm:$0xff] %vm48_vm1, %v174_v28  ;;  %v248_v29 = vpop.f32.mrb[1].mxu1 }
 0x1c9   :  { %v177_v30 = vpop.f32.mrb[2].mxu1 }
 0x1ca   :  { %182 = vst.msk [vmem:[#allocation2 + $0x8] sm:$0xff] %vm48_vm1, %v177_v30  ;;  %v249_v31 = vpop.f32.mrb[3].mxu1 }
 0x1cf   :  { %v183_v33 = vld [vmem:[#allocation2] sm:$0xff] }
 0x1d0   :  { %v192_v34 = vadd.f32 %v221_v32, %v183_v33 }
 0x1d1   :  { %v184_v35 = vld [vmem:[#allocation2 + $0x8] sm:$0xff] }
 0x1d2   :  { %v193_v36 = vadd.f32 %v221_v32, %v184_v35  ;;  %194 = vst.msk [vmem:[#allocation3] sm:$0xff] %vm48_vm1, %v192_v34 }
 0x1d4   :  { %195 = vst.msk [vmem:[#allocation3 + $0x8] sm:$0xff] %vm48_vm1, %v193_v36 }
 0x1d5   :  { %276 = shalt.err (!%p273_p4)
}
 0x1d6   :  { %s277_s13 = scalar_lea.hbm %s376_s5, 256 }
 0x1d7   :  { %p278_p5 = scmp.ne.s32.totalorder %s376_s5, %s277_s13  ;;  %p281_p6 = scmp.lt.u32.totalorder %s277_s13, %s376_s5 }
 0x1d9   :  { %p283_p7 = pnand %p281_p6, %p278_p5 }
 0x1db   :  { %286 = shalt.err (!%p283_p7)
}
 0x1dc   :  { %s292_s18 = smov 128   ;;  %s293_s19 = smov 8  }
 0x1dd   :  { %207 = dma.vmem_to_hbm [thread:$0]  %s202_s10, 256, %s376_s5, [#allocation4], %s292_s18, %s292_s18, %s293_s19  }
 0x1de   :  { %287 = dma.done.wait [#allocation4], 256  }
 0x1df   :  { %288 = vsyncadd [#allocation4], 4294967040 }
 0x1e0   :  { %211 = vsyncpa [#allocation4], 1 }

</bundles_post_ra>
